<compile_context>
chip_gen: v5e
topology: v5e:2x2
jax: 0.10.0
libtpu: 0.0.40
codegen_flags: <defaults>
</compile_context>

<pallas_src>
import math
from functools import partial

import jax
import jax.numpy as jnp
from jax import lax
from jax.experimental import pallas as pl
from jax.experimental.pallas import tpu as pltpu


def _round_up(a, b):
    return ((a + b - 1) // b) * b


def _mlp_kernel(x_ref, s_ref, w1_ref, b1_ref, w2_ref, b2_ref, w3_ref, b3_ref,
                o_ref, d_ref, *, chunk):
    # ---- Stage 1: de-interleave the tile on the (otherwise idle) MXU. -----
    # x_ref is a (ts, 256) tile of the raw row-major input: within each row g,
    # lane 2i holds x0 and lane 2i+1 holds x1 of batch row 128*g + i.
    # s_ref is a constant 0/1 selection matrix, so
    #   d[:,   0:128] = x0 (lane-dense),  d[:, 128:256] = x1 (lane-dense).
    # (One nonzero per column -> the matmul is numerically a pure gather.)
    d_ref[...] = jnp.dot(x_ref[...], s_ref[...],
                         preferred_element_type=jnp.float32)

    # Tiny weights/biases live in SMEM; read once as f32 scalars.
    w1 = [[w1_ref[i, j] for j in range(5)] for i in range(2)]
    b1 = [b1_ref[j] for j in range(5)]
    w2 = [[w2_ref[i, j] for j in range(3)] for i in range(5)]
    b2 = [b2_ref[j] for j in range(3)]
    # Negate fc3 at the scalar level: z_neg = -(h2 @ w3 + b3) directly, so the
    # sigmoid needs no full-tile negate on the VALU.
    nw3 = [-w3_ref[i, 0] for i in range(3)]
    nb3 = -b3_ref[0]

    # ---- Stage 2: register-blocked elementwise MLP on the VPU/EUP. --------
    # `chunk` <= 32 rows keeps the ~9 live (chunk,128) f32 values well inside
    # the 64-vreg file; lax.fori_loop bounds the live ranges (a static Python
    # loop over the whole tile would not).
    nchunks = o_ref.shape[0] // chunk

    def body(c, carry):
        r0 = pl.multiple_of(c * chunk, chunk)
        x0 = d_ref[pl.ds(r0, chunk), pl.ds(0, 128)]
        x1 = d_ref[pl.ds(r0, chunk), pl.ds(128, 128)]

        # fc1 + ReLU (2 -> 5): per-output-feature broadcast FMA chains.
        h1 = [jnp.maximum(x0 * w1[0][j] + x1 * w1[1][j] + b1[j], 0.0)
              for j in range(5)]

        # fc2 + ReLU (5 -> 3)
        h2 = []
        for j in range(3):
            acc = h1[0] * w2[0][j] + b2[j]
            for k in range(1, 5):
                acc = acc + h1[k] * w2[k][j]
            h2.append(jnp.maximum(acc, 0.0))

        # fc3 + Sigmoid (3 -> 1), pre-negated weights.
        zneg = h2[0] * nw3[0] + nb3
        for k in range(1, 3):
            zneg = zneg + h2[k] * nw3[k]
        # exp -> EUP; approximate reciprocal -> EUP (VALU only does the +1).
        o_ref[pl.ds(r0, chunk), :] = pl.reciprocal(1.0 + jnp.exp(zneg),
                                                   approx=True)
        return carry

    lax.fori_loop(0, nchunks, body, 0)


@partial(jax.jit, static_argnames=("ts_max",))
def riego_forward(x, params, *, ts_max=1024):
    """Forward pass of RiegoModelo.  x: (N, 2) float32 -> (N, 1) float32."""
    x = x.astype(jnp.float32)
    n = x.shape[0]
    assert x.shape[1] == 2

    # Pad only to a 1024-row boundary (<= 1023 dummy rows), never to a full
    # tile multiple; ragged last grid blocks are handled by masked DMA.  When
    # N is already a multiple of 1024 the pad is skipped and the reshape below
    # is a free, layout-preserving view (no extra HBM pass).
    n_pad = _round_up(n, 1024)
    if n_pad != n:
        x = jnp.pad(x, ((0, n_pad - n), (0, 0)))
    m = n_pad // 128                       # 128-row groups (multiple of 8)
    xr = x.reshape(m, 256)                 # interleaved, lane-dense, zero-copy

    # Sublane tile: large enough to amortize the ~0.35us/step overhead, small
    # enough to give >= 8 grid steps when possible (v7x megacore sharding).
    ts = max(8, min(ts_max, _round_up(pl.cdiv(m, 8), 8)))
    ts = min(ts, m)
    chunk = math.gcd(ts, 32)               # inner register-blocking: 8/16/32
    grid = (pl.cdiv(m, ts),)

    # Constant de-interleave matrix: output column j selects input lane 2j
    # (j < 128 -> x0) or 2*(j-128)+1 (j >= 128 -> x1).
    col = jnp.arange(256)
    src = jnp.where(col < 128, 2 * col, 2 * (col - 128) + 1)
    sel = (jnp.arange(256)[:, None] == src[None, :]).astype(jnp.float32)

    smem = lambda: pl.BlockSpec(memory_space=pltpu.MemorySpace.SMEM)

    cost = pl.CostEstimate(
        flops=int(2 * m * 256 * 256                      # MXU de-interleave
                  + 2 * m * 128 * (2 * 5 + 5 * 3 + 3)),  # VPU layers
        transcendentals=int(m * 128),
        bytes_accessed=int(4 * m * (256 + 128) + 4 * 256 * 256 + 4 * 32),
    )

    out = pl.pallas_call(
        partial(_mlp_kernel, chunk=chunk),
        out_shape=jax.ShapeDtypeStruct((m, 128), jnp.float32),
        grid=grid,
        in_specs=[
            pl.BlockSpec((ts, 256), lambda i: (i, 0)),    # raw interleaved x
            pl.BlockSpec((256, 256), lambda i: (0, 0)),   # selection matrix
            smem(), smem(),                               # w1, b1
            smem(), smem(),                               # w2, b2
            smem(), smem(),                               # w3, b3
        ],
        out_specs=pl.BlockSpec((ts, 128), lambda i: (i, 0)),
        scratch_shapes=[pltpu.VMEM((ts, 256), jnp.float32)],
        compiler_params=pltpu.CompilerParams(
            dimension_semantics=("parallel",)),
        cost_estimate=cost,
    )(xr, sel, params["w1"], params["b1"], params["w2"], params["b2"],
      params["w3"], params["b3"])

    # out[g, i] is the prediction for batch row 128*g + i.
    return out.reshape(n_pad)[:n].reshape(n, 1)


def init_params():
    """Deterministic synthetic parameters matching nn.Linear shapes.

    torch fc weights are (out, in); we store the transpose (in, out).
    Biases are 1-D (out,) so they sit naturally in SMEM."""
    key = jax.random.PRNGKey(42)
    k1, k2, k3, k4, k5, k6 = jax.random.split(key, 6)

    def lin(kw, kb, fan_in, fan_out):
        bound = 1.0 / jnp.sqrt(jnp.float32(fan_in))
        w = jax.random.uniform(kw, (fan_in, fan_out), jnp.float32, -bound, bound)
        b = jax.random.uniform(kb, (fan_out,), jnp.float32, -bound, bound)
        return w, b

    w1, b1 = lin(k1, k2, 2, 5)
    w2, b2 = lin(k3, k4, 5, 3)
    w3, b3 = lin(k5, k6, 3, 1)
    return {"w1": w1, "b1": b1, "w2": w2, "b2": b2, "w3": w3, "b3": b3}


def _reference_forward(x, p):
    h1 = jnp.maximum(x @ p["w1"] + p["b1"], 0.0)
    h2 = jnp.maximum(h1 @ p["w2"] + p["b2"], 0.0)
    return jax.nn.sigmoid(h2 @ p["w3"] + p["b3"])


if __name__ == "__main__":
    params = init_params()

    # Small demo batch (matches the module's (N, 2) input shape).
    x = jax.random.normal(jax.random.PRNGKey(0), (8, 2), dtype=jnp.float32)
    out = jax.block_until_ready(riego_forward(x, params))
    ref = _reference_forward(x, params)
    assert out.shape == (8, 1), out.shape
    # Tolerance covers the EUP approximate reciprocal in the sigmoid and the
    # MXU-based de-interleave.
    assert jnp.allclose(out, ref, atol=5e-3, rtol=0.0), (out, ref)

    # Larger ragged batch: exercises the multi-step grid (m=72 groups, ts=16
    # -> 5 steps), the masked ragged last block, and the 1024-row pad tail.
    x2 = jax.random.normal(jax.random.PRNGKey(1), (9000, 2), dtype=jnp.float32)
    out2 = jax.block_until_ready(riego_forward(x2, params))
    ref2 = _reference_forward(x2, params)
    assert out2.shape == (9000, 1), out2.shape
    assert bool(jnp.all(jnp.isfinite(out2)))
    assert jnp.allclose(out2, ref2, atol=5e-3, rtol=0.0)

    print("KERNEL_OK")
</pallas_src>

<mosaic_0001>
module attributes {stable_mosaic.version = 11 : i64} {
  func.func @_mlp_kernel(%arg0: i32, %arg1: memref<8x256xf32, #tpu.memory_space<vmem>>, %arg2: memref<256x256xf32, #tpu.memory_space<vmem>>, %arg3: memref<2x5xf32, #tpu.memory_space<smem>>, %arg4: memref<5xf32, #tpu.memory_space<smem>>, %arg5: memref<5x3xf32, #tpu.memory_space<smem>>, %arg6: memref<3xf32, #tpu.memory_space<smem>>, %arg7: memref<3x1xf32, #tpu.memory_space<smem>>, %arg8: memref<1xf32, #tpu.memory_space<smem>>, %arg9: memref<8x128xf32, #tpu.memory_space<vmem>>, %arg10: memref<8x256xf32, #tpu.memory_space<vmem>>) attributes {dimension_semantics = [#tpu.dimension_semantics<parallel>], iteration_bounds = array<i64: 1>, scalar_prefetch = 0 : i64, scratch_operands = 1 : i64, tpu.core_type = #tpu.core_type<tc>, window_params = [{transform_indices = @transform_0, window_bounds = array<i64: 8, 256>}, {pipeline_mode = #tpu.pipeline_mode<synchronous>, transform_indices = @transform_1, window_bounds = array<i64: 256, 256>}, {transform_indices = @transform_2, window_bounds = array<i64: 2, 5>}, {transform_indices = @transform_3, window_bounds = array<i64: 5>}, {transform_indices = @transform_4, window_bounds = array<i64: 5, 3>}, {transform_indices = @transform_5, window_bounds = array<i64: 3>}, {transform_indices = @transform_6, window_bounds = array<i64: 3, 1>}, {transform_indices = @transform_7, window_bounds = array<i64: 1>}, {transform_indices = @transform_8, window_bounds = array<i64: 8, 128>}]} {
    %c0 = arith.constant 0 : index
    %c0_0 = arith.constant 0 : index
    %0 = vector.load %arg1[%c0, %c0_0] : memref<8x256xf32, #tpu.memory_space<vmem>>, vector<8x256xf32>
    %c0_1 = arith.constant 0 : index
    %c0_2 = arith.constant 0 : index
    %1 = vector.load %arg2[%c0_1, %c0_2] : memref<256x256xf32, #tpu.memory_space<vmem>>, vector<256x256xf32>
    %cst = arith.constant dense<0.000000e+00> : vector<8x256xf32>
    %2 = tpu.matmul %0, %1, %cst {dimension_numbers = #tpu.dot_dimension_numbers<[1], [0], [0], [1], [0, 0, 1, 1], [], []>} : vector<8x256xf32>, vector<256x256xf32>, vector<8x256xf32> -> vector<8x256xf32>
    %c0_3 = arith.constant 0 : index
    %c0_4 = arith.constant 0 : index
    %3 = vector.load %arg10[%c0_3, %c0_4] : memref<8x256xf32, #tpu.memory_space<vmem>>, vector<8x256xf32>
    tpu.vector_store %arg10[%c0_3, %c0_4], %2 {strides = array<i32>} : memref<8x256xf32, #tpu.memory_space<vmem>>, vector<8x256xf32>,
    %c0_5 = arith.constant 0 : index
    %c0_6 = arith.constant 0 : index
    %4 = memref.load %arg3[%c0_5, %c0_6] : memref<2x5xf32, #tpu.memory_space<smem>>
    %c0_7 = arith.constant 0 : index
    %c1 = arith.constant 1 : index
    %5 = memref.load %arg3[%c0_7, %c1] : memref<2x5xf32, #tpu.memory_space<smem>>
    %c0_8 = arith.constant 0 : index
    %c2 = arith.constant 2 : index
    %6 = memref.load %arg3[%c0_8, %c2] : memref<2x5xf32, #tpu.memory_space<smem>>
    %c0_9 = arith.constant 0 : index
    %c3 = arith.constant 3 : index
    %7 = memref.load %arg3[%c0_9, %c3] : memref<2x5xf32, #tpu.memory_space<smem>>
    %c0_10 = arith.constant 0 : index
    %c4 = arith.constant 4 : index
    %8 = memref.load %arg3[%c0_10, %c4] : memref<2x5xf32, #tpu.memory_space<smem>>
    %c1_11 = arith.constant 1 : index
    %c0_12 = arith.constant 0 : index
    %9 = memref.load %arg3[%c1_11, %c0_12] : memref<2x5xf32, #tpu.memory_space<smem>>
    %c1_13 = arith.constant 1 : index
    %c1_14 = arith.constant 1 : index
    %10 = memref.load %arg3[%c1_13, %c1_14] : memref<2x5xf32, #tpu.memory_space<smem>>
    %c1_15 = arith.constant 1 : index
    %c2_16 = arith.constant 2 : index
    %11 = memref.load %arg3[%c1_15, %c2_16] : memref<2x5xf32, #tpu.memory_space<smem>>
    %c1_17 = arith.constant 1 : index
    %c3_18 = arith.constant 3 : index
    %12 = memref.load %arg3[%c1_17, %c3_18] : memref<2x5xf32, #tpu.memory_space<smem>>
    %c1_19 = arith.constant 1 : index
    %c4_20 = arith.constant 4 : index
    %13 = memref.load %arg3[%c1_19, %c4_20] : memref<2x5xf32, #tpu.memory_space<smem>>
    %c0_21 = arith.constant 0 : index
    %14 = memref.load %arg4[%c0_21] : memref<5xf32, #tpu.memory_space<smem>>
    %c1_22 = arith.constant 1 : index
    %15 = memref.load %arg4[%c1_22] : memref<5xf32, #tpu.memory_space<smem>>
    %c2_23 = arith.constant 2 : index
    %16 = memref.load %arg4[%c2_23] : memref<5xf32, #tpu.memory_space<smem>>
    %c3_24 = arith.constant 3 : index
    %17 = memref.load %arg4[%c3_24] : memref<5xf32, #tpu.memory_space<smem>>
    %c4_25 = arith.constant 4 : index
    %18 = memref.load %arg4[%c4_25] : memref<5xf32, #tpu.memory_space<smem>>
    %c0_26 = arith.constant 0 : index
    %c0_27 = arith.constant 0 : index
    %19 = memref.load %arg5[%c0_26, %c0_27] : memref<5x3xf32, #tpu.memory_space<smem>>
    %c0_28 = arith.constant 0 : index
    %c1_29 = arith.constant 1 : index
    %20 = memref.load %arg5[%c0_28, %c1_29] : memref<5x3xf32, #tpu.memory_space<smem>>
    %c0_30 = arith.constant 0 : index
    %c2_31 = arith.constant 2 : index
    %21 = memref.load %arg5[%c0_30, %c2_31] : memref<5x3xf32, #tpu.memory_space<smem>>
    %c1_32 = arith.constant 1 : index
    %c0_33 = arith.constant 0 : index
    %22 = memref.load %arg5[%c1_32, %c0_33] : memref<5x3xf32, #tpu.memory_space<smem>>
    %c1_34 = arith.constant 1 : index
    %c1_35 = arith.constant 1 : index
    %23 = memref.load %arg5[%c1_34, %c1_35] : memref<5x3xf32, #tpu.memory_space<smem>>
    %c1_36 = arith.constant 1 : index
    %c2_37 = arith.constant 2 : index
    %24 = memref.load %arg5[%c1_36, %c2_37] : memref<5x3xf32, #tpu.memory_space<smem>>
    %c2_38 = arith.constant 2 : index
    %c0_39 = arith.constant 0 : index
    %25 = memref.load %arg5[%c2_38, %c0_39] : memref<5x3xf32, #tpu.memory_space<smem>>
    %c2_40 = arith.constant 2 : index
    %c1_41 = arith.constant 1 : index
    %26 = memref.load %arg5[%c2_40, %c1_41] : memref<5x3xf32, #tpu.memory_space<smem>>
    %c2_42 = arith.constant 2 : index
    %c2_43 = arith.constant 2 : index
    %27 = memref.load %arg5[%c2_42, %c2_43] : memref<5x3xf32, #tpu.memory_space<smem>>
    %c3_44 = arith.constant 3 : index
    %c0_45 = arith.constant 0 : index
    %28 = memref.load %arg5[%c3_44, %c0_45] : memref<5x3xf32, #tpu.memory_space<smem>>
    %c3_46 = arith.constant 3 : index
    %c1_47 = arith.constant 1 : index
    %29 = memref.load %arg5[%c3_46, %c1_47] : memref<5x3xf32, #tpu.memory_space<smem>>
    %c3_48 = arith.constant 3 : index
    %c2_49 = arith.constant 2 : index
    %30 = memref.load %arg5[%c3_48, %c2_49] : memref<5x3xf32, #tpu.memory_space<smem>>
    %c4_50 = arith.constant 4 : index
    %c0_51 = arith.constant 0 : index
    %31 = memref.load %arg5[%c4_50, %c0_51] : memref<5x3xf32, #tpu.memory_space<smem>>
    %c4_52 = arith.constant 4 : index
    %c1_53 = arith.constant 1 : index
    %32 = memref.load %arg5[%c4_52, %c1_53] : memref<5x3xf32, #tpu.memory_space<smem>>
    %c4_54 = arith.constant 4 : index
    %c2_55 = arith.constant 2 : index
    %33 = memref.load %arg5[%c4_54, %c2_55] : memref<5x3xf32, #tpu.memory_space<smem>>
    %c0_56 = arith.constant 0 : index
    %34 = memref.load %arg6[%c0_56] : memref<3xf32, #tpu.memory_space<smem>>
    %c1_57 = arith.constant 1 : index
    %35 = memref.load %arg6[%c1_57] : memref<3xf32, #tpu.memory_space<smem>>
    %c2_58 = arith.constant 2 : index
    %36 = memref.load %arg6[%c2_58] : memref<3xf32, #tpu.memory_space<smem>>
    %c0_59 = arith.constant 0 : index
    %c0_60 = arith.constant 0 : index
    %37 = memref.load %arg7[%c0_59, %c0_60] : memref<3x1xf32, #tpu.memory_space<smem>>
    %cst_61 = arith.constant 0.000000e+00 : f32
    %38 = arith.subf %cst_61, %37 : f32
    %c1_62 = arith.constant 1 : index
    %c0_63 = arith.constant 0 : index
    %39 = memref.load %arg7[%c1_62, %c0_63] : memref<3x1xf32, #tpu.memory_space<smem>>
    %cst_64 = arith.constant 0.000000e+00 : f32
    %40 = arith.subf %cst_64, %39 : f32
    %c2_65 = arith.constant 2 : index
    %c0_66 = arith.constant 0 : index
    %41 = memref.load %arg7[%c2_65, %c0_66] : memref<3x1xf32, #tpu.memory_space<smem>>
    %cst_67 = arith.constant 0.000000e+00 : f32
    %42 = arith.subf %cst_67, %41 : f32
    %c0_68 = arith.constant 0 : index
    %43 = memref.load %arg8[%c0_68] : memref<1xf32, #tpu.memory_space<smem>>
    %cst_69 = arith.constant 0.000000e+00 : f32
    %44 = arith.subf %cst_69, %43 : f32
    %c0_i32 = arith.constant 0 : i32
    %c8_i32 = arith.constant 8 : i32
    %45 = arith.muli %c0_i32, %c8_i32 : i32
    %46 = tpu.assume_multiple %45, 8 : i32
    %47 = arith.index_cast %46 : i32 to index
    %c0_70 = arith.constant 0 : index
    %48 = vector.load %arg10[%47, %c0_70] : memref<8x256xf32, #tpu.memory_space<vmem>>, vector<8x128xf32>
    %49 = arith.index_cast %46 : i32 to index
    %c128 = arith.constant 128 : index
    %50 = vector.load %arg10[%49, %c128] : memref<8x256xf32, #tpu.memory_space<vmem>>, vector<8x128xf32>
    %51 = vector.broadcast %4 : f32 to vector<8x128xf32>
    %52 = arith.mulf %48, %51 : vector<8x128xf32>
    %53 = vector.broadcast %9 : f32 to vector<8x128xf32>
    %54 = arith.mulf %50, %53 : vector<8x128xf32>
    %55 = arith.addf %52, %54 : vector<8x128xf32>
    %56 = vector.broadcast %14 : f32 to vector<8x128xf32>
    %57 = arith.addf %55, %56 : vector<8x128xf32>
    %cst_71 = arith.constant 0.000000e+00 : f32
    %58 = vector.broadcast %cst_71 : f32 to vector<8x128xf32>
    %59 = arith.maximumf %57, %58 : vector<8x128xf32>
    %60 = vector.broadcast %5 : f32 to vector<8x128xf32>
    %61 = arith.mulf %48, %60 : vector<8x128xf32>
    %62 = vector.broadcast %10 : f32 to vector<8x128xf32>
    %63 = arith.mulf %50, %62 : vector<8x128xf32>
    %64 = arith.addf %61, %63 : vector<8x128xf32>
    %65 = vector.broadcast %15 : f32 to vector<8x128xf32>
    %66 = arith.addf %64, %65 : vector<8x128xf32>
    %cst_72 = arith.constant 0.000000e+00 : f32
    %67 = vector.broadcast %cst_72 : f32 to vector<8x128xf32>
    %68 = arith.maximumf %66, %67 : vector<8x128xf32>
    %69 = vector.broadcast %6 : f32 to vector<8x128xf32>
    %70 = arith.mulf %48, %69 : vector<8x128xf32>
    %71 = vector.broadcast %11 : f32 to vector<8x128xf32>
    %72 = arith.mulf %50, %71 : vector<8x128xf32>
    %73 = arith.addf %70, %72 : vector<8x128xf32>
    %74 = vector.broadcast %16 : f32 to vector<8x128xf32>
    %75 = arith.addf %73, %74 : vector<8x128xf32>
    %cst_73 = arith.constant 0.000000e+00 : f32
    %76 = vector.broadcast %cst_73 : f32 to vector<8x128xf32>
    %77 = arith.maximumf %75, %76 : vector<8x128xf32>
    %78 = vector.broadcast %7 : f32 to vector<8x128xf32>
    %79 = arith.mulf %48, %78 : vector<8x128xf32>
    %80 = vector.broadcast %12 : f32 to vector<8x128xf32>
    %81 = arith.mulf %50, %80 : vector<8x128xf32>
    %82 = arith.addf %79, %81 : vector<8x128xf32>
    %83 = vector.broadcast %17 : f32 to vector<8x128xf32>
    %84 = arith.addf %82, %83 : vector<8x128xf32>
    %cst_74 = arith.constant 0.000000e+00 : f32
    %85 = vector.broadcast %cst_74 : f32 to vector<8x128xf32>
    %86 = arith.maximumf %84, %85 : vector<8x128xf32>
    %87 = vector.broadcast %8 : f32 to vector<8x128xf32>
    %88 = arith.mulf %48, %87 : vector<8x128xf32>
    %89 = vector.broadcast %13 : f32 to vector<8x128xf32>
    %90 = arith.mulf %50, %89 : vector<8x128xf32>
    %91 = arith.addf %88, %90 : vector<8x128xf32>
    %92 = vector.broadcast %18 : f32 to vector<8x128xf32>
    %93 = arith.addf %91, %92 : vector<8x128xf32>
    %cst_75 = arith.constant 0.000000e+00 : f32
    %94 = vector.broadcast %cst_75 : f32 to vector<8x128xf32>
    %95 = arith.maximumf %93, %94 : vector<8x128xf32>
    %96 = vector.broadcast %19 : f32 to vector<8x128xf32>
    %97 = arith.mulf %59, %96 : vector<8x128xf32>
    %98 = vector.broadcast %34 : f32 to vector<8x128xf32>
    %99 = arith.addf %97, %98 : vector<8x128xf32>
    %100 = vector.broadcast %22 : f32 to vector<8x128xf32>
    %101 = arith.mulf %68, %100 : vector<8x128xf32>
    %102 = arith.addf %99, %101 : vector<8x128xf32>
    %103 = vector.broadcast %25 : f32 to vector<8x128xf32>
    %104 = arith.mulf %77, %103 : vector<8x128xf32>
    %105 = arith.addf %102, %104 : vector<8x128xf32>
    %106 = vector.broadcast %28 : f32 to vector<8x128xf32>
    %107 = arith.mulf %86, %106 : vector<8x128xf32>
    %108 = arith.addf %105, %107 : vector<8x128xf32>
    %109 = vector.broadcast %31 : f32 to vector<8x128xf32>
    %110 = arith.mulf %95, %109 : vector<8x128xf32>
    %111 = arith.addf %108, %110 : vector<8x128xf32>
    %cst_76 = arith.constant 0.000000e+00 : f32
    %112 = vector.broadcast %cst_76 : f32 to vector<8x128xf32>
    %113 = arith.maximumf %111, %112 : vector<8x128xf32>
    %114 = vector.broadcast %20 : f32 to vector<8x128xf32>
    %115 = arith.mulf %59, %114 : vector<8x128xf32>
    %116 = vector.broadcast %35 : f32 to vector<8x128xf32>
    %117 = arith.addf %115, %116 : vector<8x128xf32>
    %118 = vector.broadcast %23 : f32 to vector<8x128xf32>
    %119 = arith.mulf %68, %118 : vector<8x128xf32>
    %120 = arith.addf %117, %119 : vector<8x128xf32>
    %121 = vector.broadcast %26 : f32 to vector<8x128xf32>
    %122 = arith.mulf %77, %121 : vector<8x128xf32>
    %123 = arith.addf %120, %122 : vector<8x128xf32>
    %124 = vector.broadcast %29 : f32 to vector<8x128xf32>
    %125 = arith.mulf %86, %124 : vector<8x128xf32>
    %126 = arith.addf %123, %125 : vector<8x128xf32>
    %127 = vector.broadcast %32 : f32 to vector<8x128xf32>
    %128 = arith.mulf %95, %127 : vector<8x128xf32>
    %129 = arith.addf %126, %128 : vector<8x128xf32>
    %cst_77 = arith.constant 0.000000e+00 : f32
    %130 = vector.broadcast %cst_77 : f32 to vector<8x128xf32>
    %131 = arith.maximumf %129, %130 : vector<8x128xf32>
    %132 = vector.broadcast %21 : f32 to vector<8x128xf32>
    %133 = arith.mulf %59, %132 : vector<8x128xf32>
    %134 = vector.broadcast %36 : f32 to vector<8x128xf32>
    %135 = arith.addf %133, %134 : vector<8x128xf32>
    %136 = vector.broadcast %24 : f32 to vector<8x128xf32>
    %137 = arith.mulf %68, %136 : vector<8x128xf32>
    %138 = arith.addf %135, %137 : vector<8x128xf32>
    %139 = vector.broadcast %27 : f32 to vector<8x128xf32>
    %140 = arith.mulf %77, %139 : vector<8x128xf32>
    %141 = arith.addf %138, %140 : vector<8x128xf32>
    %142 = vector.broadcast %30 : f32 to vector<8x128xf32>
    %143 = arith.mulf %86, %142 : vector<8x128xf32>
    %144 = arith.addf %141, %143 : vector<8x128xf32>
    %145 = vector.broadcast %33 : f32 to vector<8x128xf32>
    %146 = arith.mulf %95, %145 : vector<8x128xf32>
    %147 = arith.addf %144, %146 : vector<8x128xf32>
    %cst_78 = arith.constant 0.000000e+00 : f32
    %148 = vector.broadcast %cst_78 : f32 to vector<8x128xf32>
    %149 = arith.maximumf %147, %148 : vector<8x128xf32>
    %150 = vector.broadcast %38 : f32 to vector<8x128xf32>
    %151 = arith.mulf %113, %150 : vector<8x128xf32>
    %152 = vector.broadcast %44 : f32 to vector<8x128xf32>
    %153 = arith.addf %151, %152 : vector<8x128xf32>
    %154 = vector.broadcast %40 : f32 to vector<8x128xf32>
    %155 = arith.mulf %131, %154 : vector<8x128xf32>
    %156 = arith.addf %153, %155 : vector<8x128xf32>
    %157 = vector.broadcast %42 : f32 to vector<8x128xf32>
    %158 = arith.mulf %149, %157 : vector<8x128xf32>
    %159 = arith.addf %156, %158 : vector<8x128xf32>
    %160 = math.exp %159 : vector<8x128xf32>
    %cst_79 = arith.constant 1.000000e+00 : f32
    %161 = vector.broadcast %cst_79 : f32 to vector<8x128xf32>
    %162 = arith.addf %161, %160 : vector<8x128xf32>
    %163 = tpu.reciprocal %162 {approx = true} : vector<8x128xf32> -> vector<8x128xf32>
    %164 = arith.index_cast %46 : i32 to index
    %c0_80 = arith.constant 0 : index
    %165 = vector.load %arg9[%164, %c0_80] : memref<8x128xf32, #tpu.memory_space<vmem>>, vector<8x128xf32>
    tpu.vector_store %arg9[%164, %c0_80], %163 {strides = array<i32>} : memref<8x128xf32, #tpu.memory_space<vmem>>, vector<8x128xf32>,
    %c1_i32 = arith.constant 1 : i32
    return
  }
  func.func @transform_0(%arg0: i32) -> (i32, i32) {
    %c0_i32 = arith.constant 0 : i32
    %c0_i32_0 = arith.constant 0 : i32
    return %arg0, %c0_i32 : i32, i32
  }
  func.func @transform_1(%arg0: i32) -> (i32, i32) {
    %c0_i32 = arith.constant 0 : i32
    %c0_i32_0 = arith.constant 0 : i32
    %c0_i32_1 = arith.constant 0 : i32
    return %c0_i32, %c0_i32_0 : i32, i32
  }
  func.func @transform_2(%arg0: i32) -> (i32, i32) {
    %c0_i32 = arith.constant 0 : i32
    %c0_i32_0 = arith.constant 0 : i32
    %c0_i32_1 = arith.constant 0 : i32
    return %c0_i32, %c0_i32_0 : i32, i32
  }
  func.func @transform_3(%arg0: i32) -> i32 {
    %c0_i32 = arith.constant 0 : i32
    %c0_i32_0 = arith.constant 0 : i32
    return %c0_i32 : i32
  }
  func.func @transform_4(%arg0: i32) -> (i32, i32) {
    %c0_i32 = arith.constant 0 : i32
    %c0_i32_0 = arith.constant 0 : i32
    %c0_i32_1 = arith.constant 0 : i32
    return %c0_i32, %c0_i32_0 : i32, i32
  }
  func.func @transform_5(%arg0: i32) -> i32 {
    %c0_i32 = arith.constant 0 : i32
    %c0_i32_0 = arith.constant 0 : i32
    return %c0_i32 : i32
  }
  func.func @transform_6(%arg0: i32) -> (i32, i32) {
    %c0_i32 = arith.constant 0 : i32
    %c0_i32_0 = arith.constant 0 : i32
    %c0_i32_1 = arith.constant 0 : i32
    return %c0_i32, %c0_i32_0 : i32, i32
  }
  func.func @transform_7(%arg0: i32) -> i32 {
    %c0_i32 = arith.constant 0 : i32
    %c0_i32_0 = arith.constant 0 : i32
    return %c0_i32 : i32
  }
  func.func @transform_8(%arg0: i32) -> (i32, i32) {
    %c0_i32 = arith.constant 0 : i32
    %c0_i32_0 = arith.constant 0 : i32
    return %arg0, %c0_i32 : i32, i32
  }
}

</mosaic_0001>

<bundles_post_ra>
// kernel: riego_forward.1
= control target key start
LH: loop header
LB: loop body
LE: loop exit
PB: predicated region body
PF: predicated region fallthrough
CT: control target
= control target key end

     0   :  { %14 = vsyncpa [#allocation5], 0  ;;  %s879_s0 = inlined_call_operand.vmem [shape: f32[8,256], index: 0, kind: input, shape index: {}]   ;;  %s880_s1 = inlined_call_operand.vmem [shape: f32[256,256], index: 1, kind: input, shape index: {}]   ;;  %s881_s2 = inlined_call_operand.vmem [shape: f32[2,5], index: 2, kind: input, shape index: {}]   ;;  %s882_s3 = inlined_call_operand.vmem [shape: f32[5], index: 3, kind: input, shape index: {}]   ;;  %s883_s4 = inlined_call_operand.vmem [shape: f32[5,3], index: 4, kind: input, shape index: {}]   ;;  %s884_s5 = inlined_call_operand.vmem [shape: f32[3], index: 5, kind: input, shape index: {}]   ;;  %s885_s6 = inlined_call_operand.vmem [shape: f32[3,1], index: 6, kind: input, shape index: {}]   ;;  %s886_s7 = inlined_call_operand.<no memory space> [shape: f32[1], index: 7, kind: input, shape index: {}]   ;;  %s887_s8 = inlined_call_operand.vmem [shape: f32[8,128], index: 8, kind: output, shape index: {}]  }
   0x1   :  { %15 = vsyncpa [#allocation7], 0  ;;  %s35_s29 = sshll.u32 %s882_s3, 4  ;;  %s36_s29 = int_to_ptr.vmem [resolvable:$true] %s35_s29 }
   0x2   :  { %16 = vsyncpa [#allocation10], 0  ;;  %s53_s10 = sshll.u32 %s884_s5, 4  ;;  %s502_s11 = smov [#allocation6]   ;;  %s54_s10 = int_to_ptr.vmem [resolvable:$true] %s53_s10 }
   0x3   :  { %38 = dma.vmem_to_smem %s36_s29, 16, %s502_s11, [#allocation7]  }
   0x4   :  { %s503_s12 = smov [#allocation9]   ;;  %s26_s15 = sshll.u32 %s881_s2, 4  ;;  %s27_s15 = int_to_ptr.vmem [resolvable:$true] %s26_s15 }
   0x5   :  { %56 = dma.vmem_to_smem %s54_s10, 16, %s503_s12, [#allocation10]  }
   0x6   :  { %s44_s3 = sshll.u32 %s883_s4, 4  ;;  %s504_s18 = smov [#allocation4]   ;;  %s45_s3 = int_to_ptr.vmem [resolvable:$true] %s44_s3 }
   0x7   :  { %29 = dma.vmem_to_smem %s27_s15, 32, %s504_s18, [#allocation5]  }
   0x8   :  { %s505_s19 = smov [#allocation8]   ;;  %s62_s21 = sshll.u32 %s885_s6, 4  ;;  %s63_s21 = int_to_ptr.vmem [resolvable:$true] %s62_s21 }
   0x9   :  { %47 = dma.vmem_to_smem %s45_s3, 128, %s505_s19, [#allocation7]  }
   0xa   :  { %s506_s22 = smov [#allocation11]  }
   0xb   :  { %65 = dma.vmem_to_smem %s63_s21, 64, %s506_s22, [#allocation10]  }
   0xc   :  { %496 = dma.done.wait [#allocation5], 32  }
   0xd   :  { %497 = vsyncadd [#allocation5], 4294967264 }
   0xe   :  { %498 = dma.done.wait [#allocation7], 144  }
   0xf   :  { %499 = vsyncadd [#allocation7], 4294967152 }
  0x10   :  { %500 = dma.done.wait [#allocation10], 80  }
  0x11   :  { %501 = vsyncadd [#allocation10], 4294967216 }
  0x12   :  { %88 = sfence }
  0x13   :  { %v122_v0 = vld [vmem:[%s880_s1 + $0xf8] sm:$0xff]  ;;  %v120_v2 = vld [vmem:[%s880_s1 + $0xe8] sm:$0xff]  ;;  %v121_v6 = vld [vmem:[%s880_s1 + $0xf0] sm:$0xff]  ;;  %s765_s5 = sld [smem:[#allocation4]] }
  0x14   :  { %v154_v1 = vld [vmem:[%s880_s1 + $0x1f8] sm:$0xff]  ;;  %195 = vmatpush.msra.mxu2 %v122_v0  ;;  %v152_v3 = vld [vmem:[%s880_s1 + $0x1e8] sm:$0xff]  ;;  %v153_v7 = vld [vmem:[%s880_s1 + $0x1f0] sm:$0xff]  ;;  %155 = vmatpush.msra.mxu0 %v121_v6  ;;  %s767_s20 = sld [smem:[#allocation4 + $0x1]] }
  0x15   :  { %215 = vmatpush.msra.mxu3 %v154_v1  ;;  %v118_v4 = vld [vmem:[%s880_s1 + $0xd8] sm:$0xff]  ;;  %v119_v8 = vld [vmem:[%s880_s1 + $0xe0] sm:$0xff]  ;;  %175 = vmatpush.msra.mxu1 %v153_v7  ;;  %v116_v10 = vld [vmem:[%s880_s1 + $0xc8] sm:$0xff]  ;;  %s769_s21 = sld [smem:[#allocation4 + $0x2]] }
  0x16   :  { %v150_v5 = vld [vmem:[%s880_s1 + $0x1d8] sm:$0xff]  ;;  %196 = vmatpush.msra.mxu2 %v120_v2  ;;  %v151_v9 = vld [vmem:[%s880_s1 + $0x1e0] sm:$0xff]  ;;  %v148_v11 = vld [vmem:[%s880_s1 + $0x1c8] sm:$0xff]  ;;  %156 = vmatpush.msra.mxu0 %v119_v8  ;;  %s771_s22 = sld [smem:[#allocation4 + $0x3]] }
  0x17   :  { %216 = vmatpush.msra.mxu3 %v152_v3  ;;  %v117_v12 = vld [vmem:[%s880_s1 + $0xd0] sm:$0xff]  ;;  %176 = vmatpush.msra.mxu1 %v151_v9  ;;  %v114_v14 = vld [vmem:[%s880_s1 + $0xb8] sm:$0xff]  ;;  %v115_v16 = vld [vmem:[%s880_s1 + $0xc0] sm:$0xff]  ;;  %s773_s2 = sld [smem:[#allocation4 + $0x4]] }
  0x18   :  { %197 = vmatpush.msra.mxu2 %v118_v4  ;;  %v149_v13 = vld [vmem:[%s880_s1 + $0x1d0] sm:$0xff]  ;;  %v146_v15 = vld [vmem:[%s880_s1 + $0x1b8] sm:$0xff]  ;;  %v147_v17 = vld [vmem:[%s880_s1 + $0x1c0] sm:$0xff]  ;;  %157 = vmatpush.msra.mxu0 %v117_v12  ;;  %s775_s4 = sld [smem:[#allocation4 + $0x80]] }
  0x19   :  { %217 = vmatpush.msra.mxu3 %v150_v5  ;;  %177 = vmatpush.msra.mxu1 %v149_v13  ;;  %v112_v18 = vld [vmem:[%s880_s1 + $0xa8] sm:$0xff]  ;;  %v113_v20 = vld [vmem:[%s880_s1 + $0xb0] sm:$0xff]  ;;  %v110_v22 = vld [vmem:[%s880_s1 + $0x98] sm:$0xff]  ;;  %s777_s23 = sld [smem:[#allocation4 + $0x81]]  ;;  %v283_v4 = vstv %s765_s5 }
  0x1a   :  { %198 = vmatpush.msra.mxu2 %v116_v10  ;;  %v144_v19 = vld [vmem:[%s880_s1 + $0x1a8] sm:$0xff]  ;;  %v145_v21 = vld [vmem:[%s880_s1 + $0x1b0] sm:$0xff]  ;;  %158 = vmatpush.msra.mxu0 %v115_v16  ;;  %v142_v23 = vld [vmem:[%s880_s1 + $0x198] sm:$0xff]  ;;  %s781_s24 = sld [smem:[#allocation4 + $0x83]]  ;;  %v291_v6 = vstv %s767_s20 }
  0x1b   :  { %218 = vmatpush.msra.mxu3 %v148_v11  ;;  %178 = vmatpush.msra.mxu1 %v147_v17  ;;  %v111_v24 = vld [vmem:[%s880_s1 + $0xa0] sm:$0xff]  ;;  %v108_v26 = vld [vmem:[%s880_s1 + $0x88] sm:$0xff]  ;;  %v109_v28 = vld [vmem:[%s880_s1 + $0x90] sm:$0xff]  ;;  %s783_s25 = sld [smem:[#allocation4 + $0x84]]  ;;  %v299_v7 = vstv %s769_s21 }
  0x1c   :  { %199 = vmatpush.msra.mxu2 %v114_v14  ;;  %v143_v25 = vld [vmem:[%s880_s1 + $0x1a0] sm:$0xff]  ;;  %159 = vmatpush.msra.mxu0 %v113_v20  ;;  %v140_v27 = vld [vmem:[%s880_s1 + $0x188] sm:$0xff]  ;;  %v141_v29 = vld [vmem:[%s880_s1 + $0x190] sm:$0xff]  ;;  %s785_s6 = sld [smem:[#allocation6]]  ;;  %v307_v8 = vstv %s771_s22 }
  0x1d   :  { %219 = vmatpush.msra.mxu3 %v146_v15  ;;  %179 = vmatpush.msra.mxu1 %v145_v21  ;;  %v106_v30 = vld [vmem:[%s880_s1 + $0x78] sm:$0xff]  ;;  %v107_v32 = vld [vmem:[%s880_s1 + $0x80] sm:$0xff]  ;;  %v104_v34 = vld [vmem:[%s880_s1 + $0x68] sm:$0xff]  ;;  %s787_s26 = sld [smem:[#allocation6 + $0x1]]  ;;  %v315_v9 = vstv %s773_s2 }
  0x1e   :  { %200 = vmatpush.msra.mxu2 %v112_v18  ;;  %160 = vmatpush.msra.mxu0 %v111_v24  ;;  %v138_v31 = vld [vmem:[%s880_s1 + $0x178] sm:$0xff]  ;;  %v139_v33 = vld [vmem:[%s880_s1 + $0x180] sm:$0xff]  ;;  %v136_v35 = vld [vmem:[%s880_s1 + $0x168] sm:$0xff]  ;;  %s789_s27 = sld [smem:[#allocation6 + $0x2]]  ;;  %v285_v12 = vstv %s775_s4 }
  0x1f   :  { %220 = vmatpush.msra.mxu3 %v144_v19  ;;  %180 = vmatpush.msra.mxu1 %v143_v25  ;;  %v105_v36 = vld [vmem:[%s880_s1 + $0x70] sm:$0xff]  ;;  %v102_v38 = vld [vmem:[%s880_s1 + $0x58] sm:$0xff]  ;;  %v103_v40 = vld [vmem:[%s880_s1 + $0x60] sm:$0xff]  ;;  %s791_s28 = sld [smem:[#allocation6 + $0x3]]  ;;  %v293_v13 = vstv %s777_s23 }
  0x20   :  { %201 = vmatpush.msra.mxu2 %v110_v22  ;;  %161 = vmatpush.msra.mxu0 %v109_v28  ;;  %v137_v37 = vld [vmem:[%s880_s1 + $0x170] sm:$0xff]  ;;  %v134_v39 = vld [vmem:[%s880_s1 + $0x158] sm:$0xff]  ;;  %v135_v41 = vld [vmem:[%s880_s1 + $0x160] sm:$0xff]  ;;  %s793_s29 = sld [smem:[#allocation6 + $0x4]]  ;;  %v309_v16 = vstv %s781_s24 }
  0x21   :  { %221 = vmatpush.msra.mxu3 %v142_v23  ;;  %181 = vmatpush.msra.mxu1 %v141_v29  ;;  %v100_v42 = vld [vmem:[%s880_s1 + $0x48] sm:$0xff]  ;;  %v101_v44 = vld [vmem:[%s880_s1 + $0x50] sm:$0xff]  ;;  %v98_v46 = vld [vmem:[%s880_s1 + $0x38] sm:$0xff]  ;;  %s795_s30 = sld [smem:[#allocation8]]  ;;  %v317_v17 = vstv %s783_s25 }
  0x22   :  { %202 = vmatpush.msra.mxu2 %v108_v26  ;;  %162 = vmatpush.msra.mxu0 %v107_v32  ;;  %v132_v43 = vld [vmem:[%s880_s1 + $0x148] sm:$0xff]  ;;  %v133_v45 = vld [vmem:[%s880_s1 + $0x150] sm:$0xff]  ;;  %v130_v47 = vld [vmem:[%s880_s1 + $0x138] sm:$0xff]  ;;  %s797_s9 = sld [smem:[#allocation8 + $0x1]] }
  0x23   :  { %222 = vmatpush.msra.mxu3 %v140_v27  ;;  %182 = vmatpush.msra.mxu1 %v139_v33  ;;  %v99_v48 = vld [vmem:[%s880_s1 + $0x40] sm:$0xff]  ;;  %v96_v50 = vld [vmem:[%s880_s1 + $0x28] sm:$0xff]  ;;  %v97_v52 = vld [vmem:[%s880_s1 + $0x30] sm:$0xff]  ;;  %s799_s10 = sld [smem:[#allocation8 + $0x2]]  ;;  %v288_v27 = vstv %s785_s6 }
  0x24   :  { %203 = vmatpush.msra.mxu2 %v106_v30  ;;  %163 = vmatpush.msra.mxu0 %v105_v36  ;;  %v131_v49 = vld [vmem:[%s880_s1 + $0x140] sm:$0xff]  ;;  %v128_v51 = vld [vmem:[%s880_s1 + $0x128] sm:$0xff]  ;;  %v129_v53 = vld [vmem:[%s880_s1 + $0x130] sm:$0xff]  ;;  %s801_s11 = sld [smem:[#allocation8 + $0x80]]  ;;  %v296_v28 = vstv %s787_s26 }
  0x25   :  { %223 = vmatpush.msra.mxu3 %v138_v31  ;;  %183 = vmatpush.msra.mxu1 %v137_v37  ;;  %v94_v54 = vld [vmem:[%s880_s1 + $0x18] sm:$0xff]  ;;  %v95_v56 = vld [vmem:[%s880_s1 + $0x20] sm:$0xff]  ;;  %v92_v58 = vld [vmem:[%s880_s1 + $0x8] sm:$0xff]  ;;  %s803_s12 = sld [smem:[#allocation8 + $0x81]]  ;;  %v304_v29 = vstv %s789_s27 }
  0x26   :  { %204 = vmatpush.msra.mxu2 %v104_v34  ;;  %164 = vmatpush.msra.mxu0 %v103_v40  ;;  %v126_v55 = vld [vmem:[%s880_s1 + $0x118] sm:$0xff]  ;;  %v127_v57 = vld [vmem:[%s880_s1 + $0x120] sm:$0xff]  ;;  %v124_v59 = vld [vmem:[%s880_s1 + $0x108] sm:$0xff]  ;;  %s805_s13 = sld [smem:[#allocation8 + $0x82]]  ;;  %v320_v37 = vstv %s793_s29 }
  0x27   :  { %224 = vmatpush.msra.mxu3 %v136_v35  ;;  %184 = vmatpush.msra.mxu1 %v135_v41  ;;  %v89_v60 = vld [vmem:[%s879_s0] sm:$0xff]  ;;  %v90_v61 = vld [vmem:[%s879_s0 + $0x8] sm:$0xff]  ;;  %v93_v62 = vld [vmem:[%s880_s1 + $0x10] sm:$0xff]  ;;  %s808_s14 = sld [smem:[#allocation8 + $0x100]]  ;;  %v312_v35 = vstv %s791_s28 }
  0x28   :  { %205 = vmatpush.msra.mxu2 %v102_v38  ;;  %165 = vmatpush.msra.mxu0 %v101_v44  ;;  %v125_v63 = vld [vmem:[%s880_s1 + $0x110] sm:$0xff]  ;;  %v91_v0 = vld [vmem:[%s880_s1] sm:$0xff]  ;;  %s813_s15 = sld [smem:[#allocation8 + $0x101]]  ;;  %v323_v41 = vstv %s795_s30 }
  0x29   :  { %225 = vmatpush.msra.mxu3 %v134_v39  ;;  %185 = vmatpush.msra.mxu1 %v133_v45  ;;  %v123_v1 = vld [vmem:[%s880_s1 + $0x100] sm:$0xff]  ;;  %s779_s1 = sld [smem:[#allocation4 + $0x82]] }
  0x2a   :  { %206 = vmatpush.msra.mxu2 %v100_v42  ;;  %166 = vmatpush.msra.mxu0 %v99_v48  ;;  %s816_s16 = sld [smem:[#allocation8 + $0x180]] }
  0x2b   :  { %226 = vmatpush.msra.mxu3 %v132_v43  ;;  %186 = vmatpush.msra.mxu1 %v131_v49  ;;  %s820_s17 = sld [smem:[#allocation9]]  ;;  %v327_v43 = vstv %s801_s11  ;;  %v340_v49 = vstv %s797_s9 }
  0x2c   :  { %207 = vmatpush.msra.mxu2 %v98_v46  ;;  %167 = vmatpush.msra.mxu0 %v97_v52  ;;  %s825_s3 = sld [smem:[#allocation8 + $0x181]]  ;;  %v344_v52 = vstv %s803_s12 }
  0x2d   :  { %227 = vmatpush.msra.mxu3 %v130_v47  ;;  %187 = vmatpush.msra.mxu1 %v129_v53  ;;  %s827_s18 = sld [smem:[#allocation8 + $0x200]]  ;;  %v330_v44 = vstv %s808_s14  ;;  %v357_v53 = vstv %s799_s10 }
  0x2e   :  { %208 = vmatpush.msra.mxu2 %v96_v50  ;;  %168 = vmatpush.msra.mxu0 %v95_v56  ;;  %s829_s19 = sld [smem:[#allocation9 + $0x1]] }
  0x2f   :  { %228 = vmatpush.msra.mxu3 %v128_v51  ;;  %188 = vmatpush.msra.mxu1 %v127_v57  ;;  %v301_v15 = vstv %s779_s1  ;;  %s831_s0 = sld [smem:[#allocation9 + $0x2]]  ;;  %v347_v57 = vstv %s813_s15 }
  0x30   :  { %209 = vmatpush.msra.mxu2 %v94_v54  ;;  %169 = vmatpush.msra.mxu0 %v93_v62  ;;  %s836_s5 = sld [smem:[#allocation8 + $0x102]]  ;;  %v333_v45 = vstv %s816_s16 }
  0x31   :  { %229 = vmatpush.msra.mxu3 %v126_v55  ;;  %189 = vmatpush.msra.mxu1 %v125_v63  ;;  %s840_s20 = sld [smem:[#allocation8 + $0x182]]  ;;  %v325_v42 = vstv %s820_s17 }
  0x32   :  { %210 = vmatpush.msra.mxu2 %v92_v58  ;;  %170 = vmatpush.msra.mxu0 %v91_v0  ;;  %s843_s21 = sld [smem:[#allocation8 + $0x201]] }
  0x33   :  { %230 = vmatpush.msra.mxu3 %v124_v59  ;;  %211 = vmatmul.f32.vlgmr.msra.gmra.mxu2 %v89_v60  ;;  %s849_s22 = sld [smem:[#allocation8 + $0x202]]  ;;  %v336_v51 = vstv %s827_s18  ;;  %v350_v59 = vstv %s825_s3 }
  0x34   :  { %231 = vmatmul.f32.vlgmr.msra.gmra.mxu3 %v90_v61  ;;  %190 = vmatpush.msra.mxu1 %v123_v1  ;;  %s852_s2 = sld [smem:[#allocation11]]  ;;  %v342_v56 = vstv %s829_s19 }
  0x35   :  { %171 = vmatmul.f32.vlgmr.msra.gmra.mxu0 %v89_v60  ;;  %191 = vmatmul.f32.vlgmr.msra.gmra.mxu1 %v90_v61  ;;  %s859_s4 = sld [smem:[#allocation11 + $0x80]]  ;;  %v359_v60 = vstv %s831_s0  ;;  %v361_v61 = vstv %s805_s13 }
  0x36   :  { %s864_s23 = sld [smem:[#allocation11 + $0x100]] }
  0x37   :  { %s277_s6 = ssub.f32 0.0, %s886_s7 }
  0x3a   :  { %s271_s1 = ssub.f32 0.0, %s852_s2 }
  0x3b   :  { %s273_s26 = ssub.f32 0.0, %s859_s4 }
  0x3c   :  { %s275_s27 = ssub.f32 0.0, %s864_s23 }
  0xb2   :  { %v172_v2 = vpop.f32.mrf.mxu0  ;;  %v192_v3 = vpop.f32.mrf.mxu1 }
  0xb3   :  { %v193_v5 = vadd.f32 %v192_v3, %v172_v2 }
  0xb5   :  { %v284_v14 = vmul.f32 %v283_v4, %v193_v5  ;;  %v292_v18 = vmul.f32 %v291_v6, %v193_v5  ;;  %v300_v19 = vmul.f32 %v299_v7, %v193_v5  ;;  %v308_v20 = vmul.f32 %v307_v8, %v193_v5 }
  0xb6   :  { %v212_v10 = vpop.f32.mrf.mxu2  ;;  %v316_v22 = vmul.f32 %v315_v9, %v193_v5  ;;  %v364_v5 = vstv %s836_s5 }
  0xb7   :  { %v232_v11 = vpop.f32.mrf.mxu3 }
  0xb8   :  { %v233_v21 = vadd.f32 %v232_v11, %v212_v10 }
  0xba   :  { %v286_v23 = vmul.f32 %v285_v12, %v233_v21  ;;  %v294_v24 = vmul.f32 %v293_v13, %v233_v21  ;;  %v302_v25 = vmul.f32 %v301_v15, %v233_v21  ;;  %v310_v26 = vmul.f32 %v309_v16, %v233_v21 }
  0xbb   :  { %v318_v30 = vmul.f32 %v317_v17, %v233_v21  ;;  %v353_v12 = vstv %s843_s21  ;;  %v367_v13 = vstv %s840_s20 }
  0xbc   :  { %v287_v31 = vadd.f32 %v286_v23, %v284_v14  ;;  %v295_v32 = vadd.f32 %v294_v24, %v292_v18  ;;  %v303_v33 = vadd.f32 %v302_v25, %v300_v19  ;;  %v311_v34 = vadd.f32 %v310_v26, %v308_v20 }
  0xbd   :  { %v319_v36 = vadd.f32 %v318_v30, %v316_v22  ;;  %v370_v20 = vstv %s849_s22 }
  0xbe   :  { %v289_v38 = vadd.f32 %v288_v27, %v287_v31  ;;  %v297_v39 = vadd.f32 %v296_v28, %v295_v32  ;;  %v305_v40 = vadd.f32 %v304_v29, %v303_v33  ;;  %v313_v48 = vadd.f32 %v312_v35, %v311_v34 }
  0xbf   :  { %v321_v50 = vadd.f32 %v320_v37, %v319_v36  ;;  %v374_v31 = vstv %s271_s1  ;;  %v376_v35 = vstv %s277_s6  ;;  %v378_v36 = vstv %s273_s26 }
  0xc0   :  { %v290_v46 = vmax.f32 %v289_v38, 0.0  ;;  %v298_v47 = vmax.f32 %v297_v39, 0.0  ;;  %v306_v54 = vmax.f32 %v305_v40, 0.0  ;;  %v314_v62 = vmax.f32 %v313_v48, 0.0 }
  0xc1   :  { %v322_v2 = vmax.f32 %v321_v50, 0.0  ;;  %v381_v39 = vstv %s275_s27 }
  0xc2   :  { %v324_v55 = vmul.f32 %v323_v41, %v290_v46  ;;  %v341_v58 = vmul.f32 %v340_v49, %v290_v46  ;;  %v328_v0 = vmul.f32 %v327_v43, %v298_v47  ;;  %v358_v1 = vmul.f32 %v357_v53, %v290_v46 }
  0xc3   :  { %v345_v4 = vmul.f32 %v344_v52, %v298_v47  ;;  %v331_v7 = vmul.f32 %v330_v44, %v306_v54  ;;  %v362_v9 = vmul.f32 %v361_v61, %v298_v47  ;;  %v348_v11 = vmul.f32 %v347_v57, %v306_v54 }
  0xc4   :  { %v326_v63 = vadd.f32 %v325_v42, %v324_v55  ;;  %v343_v3 = vadd.f32 %v342_v56, %v341_v58  ;;  %v360_v8 = vadd.f32 %v359_v60, %v358_v1  ;;  %v334_v15 = vmul.f32 %v333_v45, %v314_v62 }
  0xc5   :  { %v365_v17 = vmul.f32 %v364_v5, %v306_v54  ;;  %v351_v19 = vmul.f32 %v350_v59, %v314_v62  ;;  %v337_v22 = vmul.f32 %v336_v51, %v322_v2  ;;  %v368_v24 = vmul.f32 %v367_v13, %v314_v62 }
  0xc6   :  { %v329_v6 = vadd.f32 %v328_v0, %v326_v63  ;;  %v346_v10 = vadd.f32 %v345_v4, %v343_v3  ;;  %v363_v16 = vadd.f32 %v362_v9, %v360_v8  ;;  %v354_v26 = vmul.f32 %v353_v12, %v322_v2 }
  0xc7   :  { %v371_v29 = vmul.f32 %v370_v20, %v322_v2 }
  0xc8   :  { %v332_v14 = vadd.f32 %v331_v7, %v329_v6  ;;  %v349_v18 = vadd.f32 %v348_v11, %v346_v10  ;;  %v366_v23 = vadd.f32 %v365_v17, %v363_v16 }
  0xca   :  { %v335_v21 = vadd.f32 %v334_v15, %v332_v14  ;;  %v352_v25 = vadd.f32 %v351_v19, %v349_v18  ;;  %v369_v28 = vadd.f32 %v368_v24, %v366_v23 }
  0xcc   :  { %v338_v27 = vadd.f32 %v337_v22, %v335_v21  ;;  %v355_v30 = vadd.f32 %v354_v26, %v352_v25  ;;  %v372_v33 = vadd.f32 %v371_v29, %v369_v28 }
  0xce   :  { %v339_v32 = vmax.f32 %v338_v27, 0.0  ;;  %v356_v34 = vmax.f32 %v355_v30, 0.0  ;;  %v373_v37 = vmax.f32 %v372_v33, 0.0 }
  0xd0   :  { %v375_v38 = vmul.f32 %v374_v31, %v339_v32  ;;  %v379_v41 = vmul.f32 %v378_v36, %v356_v34  ;;  %v382_v43 = vmul.f32 %v381_v39, %v373_v37 }
  0xd2   :  { %v377_v40 = vadd.f32 %v376_v35, %v375_v38 }
  0xd4   :  { %v380_v42 = vadd.f32 %v379_v41, %v377_v40 }
  0xd6   :  { %v383_v44 = vadd.f32 %v382_v43, %v380_v42 }
  0xd8   :  { %v384_v45 = vmul.f32 1.442695, %v383_v44 }
  0xda   :  { %432 = vpow2.f32 %v384_v45 }
  0xe0   :  { %v433_v46 = vpop.eup %432 }
  0xe1   :  { %v386_v47 = vadd.f32 1.0, %v433_v46 }
  0xe3   :  { %434 = vrcp.f32 %v386_v47 }
  0xe9   :  { %v435_v48 = vpop.eup %434 }
  0xea   :  { %388 = vst [vmem:[%s887_s8] sm:$0xff] %v435_v48 }
  0xeb   :  { %393 = vsyncpa [#allocation5], 1 }
  0xec   :  { %394 = vsyncpa [#allocation7], 1 }
  0xed   :  { %395 = vsyncpa [#allocation10], 1 }

</bundles_post_ra>
